<compile_context>
chip_gen: v5e
topology: v5e:2x2
jax: 0.10.0
libtpu: 0.0.40
codegen_flags: <defaults>
</compile_context>

<pallas_src>
import functools

import jax
import jax.numpy as jnp
import numpy as np
from jax import lax
from jax.experimental import pallas as pl
from jax.experimental.pallas import tpu as pltpu


def _smooth_avg_pool_kernel(x_ref, tab_ref, o_ref, *, p, w, L):
    """One grid step: G flattened images of length L = H*W.

    x_ref   : (G, L)         input block (native dtype), lane-dense
    tab_ref : (2k-1, L) f32  VMEM-resident constants (constant index_map):
                row 0         : 1 / count            (count_include_pad=False)
                rows 1..p     : row-validity mask for vertical shift +s
                rows p+1..2p  : row-validity mask for vertical shift -s
                rows 2p+1..3p : col-validity mask for horizontal shift +s
                rows 3p+1..4p : col-validity mask for horizontal shift -s
    o_ref   : (G, L)         output block
    """
    f32 = jnp.float32
    xf = x_ref[...].astype(f32)

    # Stage 1: vertical window sum.  Seed with the unshifted term; realize the
    # +/- s*w shifts with pltpu.roll (XLU), masking wrap-around with the
    # resident (1, L) masks.  Flat-index arithmetic is exact because any
    # out-of-image vertical neighbour lands outside [0, L) and is masked.
    rs = xf
    for s in range(1, p + 1):
        down = pltpu.roll(xf, (-s * w) % L, axis=1)   # xf[q + s*w]
        up = pltpu.roll(xf, (s * w) % L, axis=1)      # xf[q - s*w]
        rs = rs + down * tab_ref[s:s + 1, :]
        rs = rs + up * tab_ref[p + s:p + s + 1, :]

    # Stage 2: horizontal window sum over the row sums.
    acc = rs
    for s in range(1, p + 1):
        right = pltpu.roll(rs, (-s) % L, axis=1)      # rs[q + s]
        left = pltpu.roll(rs, s % L, axis=1)          # rs[q - s]
        acc = acc + right * tab_ref[2 * p + s:2 * p + s + 1, :]
        acc = acc + left * tab_ref[3 * p + s:3 * p + s + 1, :]

    # count_include_pad=False normalization: exact, precomputed reciprocal.
    o_ref[...] = (acc * tab_ref[0:1, :]).astype(o_ref.dtype)


def _pool_constants(h, w, k):
    """(2k-1, H*W) f32 table: exact inv-count + per-shift validity masks."""
    p = k // 2
    L = h * w
    rows = np.arange(L, dtype=np.int64) // w
    cols = np.arange(L, dtype=np.int64) % w
    cnt_v = np.minimum(rows + p + 1, h) - np.maximum(rows - p, 0)
    cnt_h = np.minimum(cols + p + 1, w) - np.maximum(cols - p, 0)
    tab = np.zeros((2 * k - 1, L), np.float32)
    tab[0] = 1.0 / (cnt_v * cnt_h).astype(np.float64)
    for s in range(1, p + 1):
        tab[s] = rows + s <= h - 1          # vertical +s valid
        tab[p + s] = rows - s >= 0          # vertical -s valid
        tab[2 * p + s] = cols + s <= w - 1  # horizontal +s valid
        tab[3 * p + s] = cols - s >= 0      # horizontal -s valid
    return tab


def _tpu_vmem_capacity_bytes():
    try:
        return int(pltpu.get_tpu_info().vmem_capacity_bytes)
    except Exception:
        return 64 * 1024 * 1024  # conservative default (v7x per-TC VMEM)


def _choose_block_rows(nc, sub, g_budget):
    """Images per grid step (sublane dim of the (G, L) block)."""
    g_budget = max(sub, g_budget // sub * sub)
    if nc <= g_budget:
        # Prefer >=2 equal, sublane-aligned, pad-free blocks so the "parallel"
        # grid axis can be sharded across both v7x TensorCores.
        cap = min(g_budget, nc // 2) // sub * sub
        for g in range(cap, 0, -sub):
            if nc % g == 0:
                return g
        return nc  # one block == whole batch (block dim == array dim is legal)
    # Large batch: keep blocks in the upper half of the budget (long DMAs) and
    # minimize padding (extra HBM traffic); an exact divisor wins outright.
    lo = max(sub, (g_budget // 2) // sub * sub)
    best_g, best_pad = g_budget, (-nc) % g_budget
    for g in range(g_budget, lo - 1, -sub):
        pad = (-nc) % g
        if pad < best_pad:
            best_g, best_pad = g, pad
        if pad == 0:
            break
    return best_g


def smoothing_avg_pooling(x, kernel_size):
    """x: (N, C, H, W). Same result as
    F.avg_pool2d(x, k, stride=1, padding=k//2, count_include_pad=False)
    for odd kernel_size (the module's size-preserving use case)."""
    k = int(kernel_size)
    if k % 2 == 0:
        # TODO(synk): even kernel_size changes the output spatial size (H+1, W+1)
        # and is not implemented in this size-preserving lane-dense path.
        raise NotImplementedError("smoothing_avg_pooling: kernel_size must be odd")
    p = k // 2
    n, c, h, w = x.shape
    nc = n * c
    L = h * w

    # ---- generation-aware tiling -------------------------------------------
    vmem_cap = _tpu_vmem_capacity_bytes()
    # ~1/24 of VMEM as f32 per block keeps (2x in + 2x out double buffers +
    # in-kernel f32 temporaries) comfortably inside the scoped limit on every
    # generation while staying in the measured >=1 MiB mem-bound sweet spot.
    budget_bytes = max(1 << 20, vmem_cap // 24)
    sub = 8 * (4 // max(1, x.dtype.itemsize))  # sublane pack: f32 8, bf16 16, i8 32
    g_budget = max(sub, budget_bytes // (L * 4))
    g = _choose_block_rows(nc, sub, g_budget)
    steps = pl.cdiv(nc, g)
    nc_pad = steps * g
    # TODO(synk): add an L-tiling (halo) path for very large H*W images where a
    # single sublane-group block exceeds the VMEM budget.

    # Layout-free reshape: (N, C, H, W) and (N*C, H*W) share row-major memory.
    x_flat = x.reshape(nc, L)
    if nc_pad != nc:  # rare fallback; _choose_block_rows prefers exact divisors
        x_flat = jnp.pad(x_flat, ((0, nc_pad - nc), (0, 0)))

    tab = jnp.asarray(_pool_constants(h, w, k))  # (2k-1, L) resident constants

    kernel = functools.partial(_smooth_avg_pool_kernel, p=p, w=w, L=L)

    out_flat = pl.pallas_call(
        kernel,
        out_shape=jax.ShapeDtypeStruct((nc_pad, L), x.dtype),
        grid_spec=pltpu.PrefetchScalarGridSpec(
            num_scalar_prefetch=0,
            grid=(steps,),
            in_specs=[
                pl.BlockSpec((g, L), lambda i: (i, 0)),
                pl.BlockSpec((2 * k - 1, L), lambda i: (0, 0)),  # DMA'd once
            ],
            out_specs=pl.BlockSpec((g, L), lambda i: (i, 0)),
        ),
        compiler_params=pltpu.CompilerParams(
            dimension_semantics=("parallel",),
            vmem_limit_bytes=min(
                96 * 1024 * 1024,
                max(32 * 1024 * 1024, vmem_cap - 16 * 1024 * 1024),
            ),
        ),
    )(x_flat, tab)

    if nc_pad != nc:
        out_flat = out_flat[:nc]
    return out_flat.reshape(n, c, h, w)


def _reference(x, kernel_size):
    """Independent JAX reference for F.avg_pool2d(..., count_include_pad=False)."""
    k = int(kernel_size)
    p = k // 2
    window = (1, 1, k, k)
    strides = (1, 1, 1, 1)
    padding = [(0, 0), (0, 0), (p, p), (p, p)]
    s = lax.reduce_window(x.astype(jnp.float32), 0.0, lax.add,
                          window, strides, padding)
    cnt = lax.reduce_window(jnp.ones_like(x, jnp.float32), 0.0, lax.add,
                            window, strides, padding)
    return (s / cnt).astype(x.dtype)


if __name__ == "__main__":
    key = jax.random.PRNGKey(0)
    N, C, H, W = 2, 4, 16, 16
    kernel_size = 3  # SmoothingAvgPooling(kernel_size=3)

    x = jax.random.normal(key, (N, C, H, W), dtype=jnp.float32)

    out = smoothing_avg_pooling(x, kernel_size)
    out = jax.block_until_ready(out)

    ref = jax.block_until_ready(_reference(x, kernel_size))
    assert out.shape == ref.shape, (out.shape, ref.shape)
    np.testing.assert_allclose(np.asarray(out), np.asarray(ref),
                               rtol=1e-5, atol=1e-5)

    print("KERNEL_OK")
</pallas_src>

<mosaic_0001>
module attributes {stable_mosaic.version = 11 : i64} {
  func.func @_smooth_avg_pool_kernel(%arg0: i32, %arg1: memref<8x256xf32, #tpu.memory_space<vmem>>, %arg2: memref<5x256xf32, #tpu.memory_space<vmem>>, %arg3: memref<8x256xf32, #tpu.memory_space<vmem>>) attributes {dimension_semantics = [#tpu.dimension_semantics<parallel>], iteration_bounds = array<i64: 1>, scalar_prefetch = 0 : i64, scratch_operands = 0 : i64, tpu.core_type = #tpu.core_type<tc>, window_params = [{transform_indices = @transform_0, window_bounds = array<i64: 8, 256>}, {pipeline_mode = #tpu.pipeline_mode<synchronous>, transform_indices = @transform_1, window_bounds = array<i64: 5, 256>}, {transform_indices = @transform_2, window_bounds = array<i64: 8, 256>}]} {
    %c0 = arith.constant 0 : index
    %c0_0 = arith.constant 0 : index
    %0 = vector.load %arg1[%c0, %c0_0] : memref<8x256xf32, #tpu.memory_space<vmem>>, vector<8x256xf32>
    %c240_i32 = arith.constant 240 : i32
    %1 = tpu.dynamic_rotate %0 by %c240_i32 dim 1 : vector<8x256xf32>, i32 -> vector<8x256xf32>
    %c16_i32 = arith.constant 16 : i32
    %2 = tpu.dynamic_rotate %0 by %c16_i32 dim 1 : vector<8x256xf32>, i32 -> vector<8x256xf32>
    %c1 = arith.constant 1 : index
    %c0_1 = arith.constant 0 : index
    %3 = vector.load %arg2[%c1, %c0_1] : memref<5x256xf32, #tpu.memory_space<vmem>>, vector<1x256xf32>
    %4 = vector.broadcast %3 : vector<1x256xf32> to vector<8x256xf32>
    %5 = arith.mulf %1, %4 : vector<8x256xf32>
    %6 = arith.addf %0, %5 : vector<8x256xf32>
    %c2 = arith.constant 2 : index
    %c0_2 = arith.constant 0 : index
    %7 = vector.load %arg2[%c2, %c0_2] : memref<5x256xf32, #tpu.memory_space<vmem>>, vector<1x256xf32>
    %8 = vector.broadcast %7 : vector<1x256xf32> to vector<8x256xf32>
    %9 = arith.mulf %2, %8 : vector<8x256xf32>
    %10 = arith.addf %6, %9 : vector<8x256xf32>
    %c255_i32 = arith.constant 255 : i32
    %11 = tpu.dynamic_rotate %10 by %c255_i32 dim 1 : vector<8x256xf32>, i32 -> vector<8x256xf32>
    %c1_i32 = arith.constant 1 : i32
    %12 = tpu.dynamic_rotate %10 by %c1_i32 dim 1 : vector<8x256xf32>, i32 -> vector<8x256xf32>
    %c3 = arith.constant 3 : index
    %c0_3 = arith.constant 0 : index
    %13 = vector.load %arg2[%c3, %c0_3] : memref<5x256xf32, #tpu.memory_space<vmem>>, vector<1x256xf32>
    %14 = vector.broadcast %13 : vector<1x256xf32> to vector<8x256xf32>
    %15 = arith.mulf %11, %14 : vector<8x256xf32>
    %16 = arith.addf %10, %15 : vector<8x256xf32>
    %c4 = arith.constant 4 : index
    %c0_4 = arith.constant 0 : index
    %17 = vector.load %arg2[%c4, %c0_4] : memref<5x256xf32, #tpu.memory_space<vmem>>, vector<1x256xf32>
    %18 = vector.broadcast %17 : vector<1x256xf32> to vector<8x256xf32>
    %19 = arith.mulf %12, %18 : vector<8x256xf32>
    %20 = arith.addf %16, %19 : vector<8x256xf32>
    %c0_5 = arith.constant 0 : index
    %c0_6 = arith.constant 0 : index
    %21 = vector.load %arg2[%c0_5, %c0_6] : memref<5x256xf32, #tpu.memory_space<vmem>>, vector<1x256xf32>
    %22 = vector.broadcast %21 : vector<1x256xf32> to vector<8x256xf32>
    %23 = arith.mulf %20, %22 : vector<8x256xf32>
    %c0_7 = arith.constant 0 : index
    %c0_8 = arith.constant 0 : index
    %24 = vector.load %arg3[%c0_7, %c0_8] : memref<8x256xf32, #tpu.memory_space<vmem>>, vector<8x256xf32>
    tpu.vector_store %arg3[%c0_7, %c0_8], %23 {strides = array<i32>} : memref<8x256xf32, #tpu.memory_space<vmem>>, vector<8x256xf32>,
    return
  }
  func.func @transform_0(%arg0: i32) -> (i32, i32) {
    %c0_i32 = arith.constant 0 : i32
    %c0_i32_0 = arith.constant 0 : i32
    return %arg0, %c0_i32 : i32, i32
  }
  func.func @transform_1(%arg0: i32) -> (i32, i32) {
    %c0_i32 = arith.constant 0 : i32
    %c0_i32_0 = arith.constant 0 : i32
    %c0_i32_1 = arith.constant 0 : i32
    return %c0_i32, %c0_i32_0 : i32, i32
  }
  func.func @transform_2(%arg0: i32) -> (i32, i32) {
    %c0_i32 = arith.constant 0 : i32
    %c0_i32_0 = arith.constant 0 : i32
    return %arg0, %c0_i32 : i32, i32
  }
}

</mosaic_0001>

<bundles_post_ra>
// kernel: tpu_custom_call.1
= control target key start
LH: loop header
LB: loop body
LE: loop exit
PB: predicated region body
PF: predicated region fallthrough
CT: control target
= control target key end

     0   :  { %7 = vsyncpa [#allocation3], 0  ;;  %s260_s0 = inlined_call_operand.hbm [shape: f32[8,256], index: 0, kind: input, shape index: {}]   ;;  %s261_s1 = inlined_call_operand.hbm [shape: f32[5,256], index: 1, kind: input, shape index: {}]   ;;  %s262_s2 = inlined_call_operand.hbm [shape: f32[8,256], index: 2, kind: output, shape index: {}]  }
   0x1   :  { %8 = vsyncpa [#allocation6], 0 }
   0x2   :  { %9 = vsyncpa [#allocation4], 0  ;;  %s15_s11 = sshll.u32 %s260_s0, 4  ;;  %s229_s12 = smov [#allocation2]   ;;  %s16_s11 = int_to_ptr.hbm [resolvable:$true] %s15_s11 }
   0x3   :  { %s17_s13 = sshll.u32 %s229_s12, 4  ;;  %s26_s16 = sshll.u32 %s261_s1, 4  ;;  %s18_s13 = int_to_ptr.vmem [resolvable:$true] %s17_s13  ;;  %s27_s16 = int_to_ptr.hbm [resolvable:$true] %s26_s16 }
   0x4   :  { %20 = dma.hbm_to_vmem [thread:$0]  %s16_s11, 256, %s18_s13, [#allocation3]  }
   0x5   :  { %s230_s17 = smov [#allocation5]  }
   0x6   :  { %s28_s18 = sshll.u32 %s230_s17, 4  ;;  %s29_s18 = int_to_ptr.vmem [resolvable:$true] %s28_s18 }
   0x7   :  { %31 = dma.hbm_to_vmem [thread:$0]  %s27_s16, 256, %s29_s18, [#allocation6]  }
   0x8   :  { %223 = dma.done.wait [#allocation3], 256  }
   0x9   :  { %224 = vsyncadd [#allocation3], 4294967040 }
   0xa   :  { %225 = dma.done.wait [#allocation6], 256  }
   0xb   :  { %226 = vsyncadd [#allocation6], 4294967040  ;;  %v40_v0 = vld [vmem:[#allocation2] sm:$0xff]  ;;  %s231_s0 = smov 16   ;;  %s232_s19 = smov 112   ;;  %v41_v1 = vld [vmem:[#allocation2 + $0x8] sm:$0xff]  ;;  %v46_v2 = vlaneseq }
   0xc   :  { %51 = vrot.lane.b32.xlu1 %v40_v0, %s231_s0  ;;  %42 = vrot.lane.b32.xlu0 %v40_v0, %s232_s19  ;;  %v59_v6 = vld [vmem:[#allocation5 + $0x1] ss:$8 sm:$0x3]  ;;  %v70_v7 = vld [vmem:[#allocation5 + $0x2] ss:$8 sm:$0x3] }
   0xd   :  { %v47_v5 = vand.u32 127, %v46_v2  ;;  %v61_v8 = vperm.slane %v59_v6, 0  ;;  %v62_v9 = vperm.slane %v59_v6, 1  ;;  %v72_v10 = vperm.slane %v70_v7, 0  ;;  %s233_s1 = smov 1   ;;  %s234_s20 = smov 127  }
   0xe   :  { %v73_v11 = vperm.slane %v70_v7, 1  ;;  %v95_v27 = vld [vmem:[#allocation5 + $0x3] ss:$8 sm:$0x3]  ;;  %s235_s21 = smov [#allocation7]   ;;  %s133_s25 = sshll.u32 %s262_s2, 4  ;;  %s134_s25 = int_to_ptr.hbm [resolvable:$true] %s133_s25 }
   0xf   :  { %vm55_vm0 = vcmp.lt.s32.totalorder %v47_v5, 16  ;;  %vm48_vm1 = vcmp.lt.s32.totalorder %v47_v5, 112  ;;  %vm84_vm2 = vcmp.lt.s32.totalorder %v47_v5, 127  ;;  %v97_v29 = vperm.slane %v95_v27, 0  ;;  %s131_s22 = sshll.u32 %s235_s21, 4  ;;  %s132_s22 = int_to_ptr.vmem [resolvable:$true] %s131_s22 }
  0x10   :  { %v98_v30 = vperm.slane %v95_v27, 1  ;;  %v106_v33 = vld [vmem:[#allocation5 + $0x4] ss:$8 sm:$0x3]  ;;  %vm91_vm3 = vcmp.lt.s32.totalorder %v47_v5, 1 }
  0x11   :  { %v108_v36 = vperm.slane %v106_v33, 0  ;;  %v109_v37 = vperm.slane %v106_v33, 1  ;;  %v116_v38 = vld [vmem:[#allocation5] ss:$8 sm:$0x3] }
  0x12   :  { %v118_v41 = vperm.slane %v116_v38, 0  ;;  %v119_v42 = vperm.slane %v116_v38, 1 }
  0x14   :  { %53 = vrot.lane.b32.xlu1 %v41_v1, %s231_s0  ;;  %44 = vrot.lane.b32.xlu0 %v41_v1, %s232_s19 }
  0x7e   :  { %v52_v3 = vpop.permute.xlu1 %51  ;;  %v43_v4 = vpop.permute.xlu0 %42 }
  0x86   :  { %v54_v12 = vpop.permute.xlu1 %53  ;;  %v45_v13 = vpop.permute.xlu0 %44 }
  0x87   :  { %v56_v14 = vsel %vm55_vm0, %v52_v3, %v54_v12  ;;  %v57_v15 = vsel %vm55_vm0, %v54_v12, %v52_v3  ;;  %v49_v16 = vsel %vm48_vm1, %v43_v4, %v45_v13  ;;  %v50_v17 = vsel %vm48_vm1, %v45_v13, %v43_v4 }
  0x88   :  { %v65_v18 = vmul.f32 %v61_v8, %v49_v16  ;;  %v66_v19 = vmul.f32 %v62_v9, %v50_v17  ;;  %v76_v20 = vmul.f32 %v72_v10, %v57_v15  ;;  %v77_v21 = vmul.f32 %v73_v11, %v56_v14 }
  0x8a   :  { %v67_v22 = vadd.f32 %v65_v18, %v40_v0  ;;  %v68_v23 = vadd.f32 %v66_v19, %v41_v1 }
  0x8c   :  { %v79_v24 = vadd.f32 %v77_v21, %v68_v23  ;;  %v78_v25 = vadd.f32 %v76_v20, %v67_v22 }
  0x8e   :  { %89 = vrot.lane.b32.xlu1 %v79_v24, %s233_s1  ;;  %87 = vrot.lane.b32.xlu0 %v78_v25, %s233_s1 }
  0x8f   :  { %80 = vrot.lane.b32.xlu2 %v78_v25, %s234_s20 }
  0x97   :  { %82 = vrot.lane.b32.xlu2 %v79_v24, %s234_s20 }
  0xe9   :  { %v81_v26 = vpop.permute.xlu2 %80 }
  0xf1   :  { %v83_v28 = vpop.permute.xlu2 %82 }
  0xf2   :  { %v85_v31 = vsel %vm84_vm2, %v81_v26, %v83_v28  ;;  %v86_v32 = vsel %vm84_vm2, %v83_v28, %v81_v26 }
  0xf3   :  { %v101_v34 = vmul.f32 %v97_v29, %v85_v31  ;;  %v102_v35 = vmul.f32 %v98_v30, %v86_v32 }
  0xf5   :  { %v103_v45 = vadd.f32 %v101_v34, %v78_v25  ;;  %v104_v46 = vadd.f32 %v102_v35, %v79_v24 }
 0x100   :  { %v90_v39 = vpop.permute.xlu1 %89  ;;  %v88_v40 = vpop.permute.xlu0 %87 }
 0x101   :  { %v92_v43 = vsel %vm91_vm3, %v88_v40, %v90_v39  ;;  %v93_v44 = vsel %vm91_vm3, %v90_v39, %v88_v40 }
 0x102   :  { %v112_v47 = vmul.f32 %v108_v36, %v93_v44  ;;  %v113_v48 = vmul.f32 %v109_v37, %v92_v43 }
 0x104   :  { %v114_v49 = vadd.f32 %v112_v47, %v103_v45  ;;  %v115_v50 = vadd.f32 %v113_v48, %v104_v46 }
 0x106   :  { %v122_v51 = vmul.f32 %v118_v41, %v114_v49  ;;  %v123_v52 = vmul.f32 %v119_v42, %v115_v50 }
 0x108   :  { %124 = vst [vmem:[#allocation7] sm:$0xff] %v122_v51 }
 0x109   :  { %125 = vst [vmem:[#allocation7 + $0x8] sm:$0xff] %v123_v52 }
 0x10a   :  { %136 = dma.vmem_to_hbm [thread:$0]  %s132_s22, 256, %s134_s25, [#allocation4]  }
 0x10b   :  { %227 = dma.done.wait [#allocation4], 256  }
 0x10c   :  { %228 = vsyncadd [#allocation4], 4294967040 }
 0x10d   :  { %141 = vsyncpa [#allocation3], 1 }
 0x10e   :  { %142 = vsyncpa [#allocation6], 1 }
 0x10f   :  { %143 = vsyncpa [#allocation4], 1 }

</bundles_post_ra>
